<compile_context>
chip_gen: v7x
topology: tpu7x:2x2x1
jax: 0.10.0
libtpu: 0.0.40
codegen_flags: <defaults>
</compile_context>

<pallas_src>
import functools

import jax
import jax.numpy as jnp
from jax import lax
from jax.experimental import pallas as pl
from jax.experimental.pallas import tpu as pltpu


def _round_up(v, m):
    return ((v + m - 1) // m) * m


def _tpu_defaults():
    """Generation-aware (vmem_limit_bytes, tile_budget_bytes, num_splits)."""
    vmem_cap = None
    try:
        vmem_cap = pltpu.get_tpu_info().vmem_capacity_bytes
    except Exception:
        pass
    if vmem_cap is None:
        vmem_cap = 64 * 1024 * 1024  # conservative (v7x-sized)

    if vmem_cap >= 96 * 1024 * 1024:        # v5e / v6e: 128 MiB physical VMEM
        vmem_limit = 100 * 1024 * 1024
        tile_budget = 56 * 1024 * 1024
    else:                                    # v7x: 64 MiB physical VMEM
        vmem_limit = 48 * 1024 * 1024
        tile_budget = 20 * 1024 * 1024

    device_kind = ""
    try:
        device_kind = jax.devices()[0].device_kind.lower()
    except Exception:
        pass
    # Only v7x has 2 TensorCores per chip; single-TC chips run splits serially,
    # so default to 1 there (avoids needless masking / smaller tiles).
    num_splits = 2 if "7" in device_kind else 1
    return vmem_limit, tile_budget, num_splits


def _label_smoothing_kernel(x_ref, tgt_ref, out_ref, acc_ref, *,
                            smoothing, num_classes, n_valid, block_rows,
                            blocks_per_split, needs_row_mask):
    p = pl.program_id(0)   # split (megacore sharding on multi-TC chips)
    i = pl.program_id(1)   # row-block loop within the split

    @pl.when(i == 0)
    def _():
        acc_ref[...] = jnp.zeros_like(acc_ref)

    x_nat = x_ref[...]          # (TM, C) native dtype (bf16 or f32)
    tgt = tgt_ref[...]          # (TM, 1) int32

    # Row max in the native dtype (exact; avoids an extra f32 pass for bf16).
    m = jnp.max(x_nat, axis=-1, keepdims=True).astype(jnp.float32)   # (TM, 1)

    # f32 restricted to the exp / sum-exp path (numerical stability).
    xf = x_nat.astype(jnp.float32)                                   # (TM, C)
    sumexp = jnp.sum(jnp.exp(xf - m), axis=-1, keepdims=True)        # (TM, 1)
    lse = m + jnp.log(sumexp)                                        # (TM, 1)

    # One-hot gather of x[row, tgt] in native dtype (adding zeros is exact),
    # via an iota compare (no dynamic gather).
    col = lax.broadcasted_iota(jnp.int32, x_nat.shape, 1)            # (TM, C)
    x_tgt = jnp.sum(jnp.where(col == tgt, x_nat, jnp.zeros_like(x_nat)),
                    axis=-1, keepdims=True).astype(jnp.float32)      # (TM, 1)

    # Raw class sum for the smoothing term (f32 accumulate).
    x_sum = jnp.sum(xf, axis=-1, keepdims=True)                      # (TM, 1)

    # loss_row = lse - [(1-s) * x[row,tgt] + (s/C) * sum_c x]
    loss = lse - ((1.0 - smoothing) * x_tgt
                  + (smoothing / num_classes) * x_sum)               # (TM, 1)

    if needs_row_mask:
        # Mask rows past the end of the (unpadded) input; also zeroes phantom
        # blocks whose index_map was clamped in-bounds.
        row0 = (p * blocks_per_split + i) * block_rows
        ridx = row0 + lax.broadcasted_iota(jnp.int32, loss.shape, 0)
        loss = jnp.where(ridx < n_valid, loss, 0.0)

    # Elementwise accumulate (no per-step cross-sublane reduce / scalar store).
    acc_ref[...] += loss

    @pl.when(i == blocks_per_split - 1)
    def _():
        partial = jnp.sum(acc_ref[...], axis=0, keepdims=True)       # (1, 1)
        out_ref[...] = jnp.zeros(out_ref.shape, out_ref.dtype) + partial


def label_smoothing_loss(x, target, *, smoothing=0.05, num_splits=None,
                         block_rows=None, vmem_tile_budget_bytes=None,
                         vmem_limit_bytes=None):
    """x: (..., C) float, target: (...,) int -> scalar float32 mean loss."""
    c = x.shape[-1]
    x2 = x.reshape(-1, c)                      # no padding copy of the big array
    tgt2d = target.reshape(-1, 1).astype(jnp.int32)
    n = x2.shape[0]

    auto_limit, auto_budget, auto_splits = _tpu_defaults()
    if vmem_limit_bytes is None:
        vmem_limit_bytes = auto_limit
    if vmem_tile_budget_bytes is None:
        vmem_tile_budget_bytes = auto_budget
    if num_splits is None:
        num_splits = auto_splits

    # Tile sizing: largest row block whose double-buffered input tile plus live
    # (TM, C) temporaries (f32 upcast, exp, iota, mask, native select) fits the
    # budget, with margin for the lane-padded tgt tile and the f32 accumulator.
    itemsize = x2.dtype.itemsize
    per_row_bytes = c * (3 * itemsize + 24) + 2048
    if block_rows is None:
        tm = vmem_tile_budget_bytes // max(per_row_bytes, 1)
        tm = min(tm, 1024, _round_up(-(-n // max(num_splits, 1)), 8))
        tm = max(8, (tm // 8) * 8)
    else:
        tm = max(8, (block_rows // 8) * 8)

    total_blocks = -(-n // tm)                       # cdiv; last block may be ragged
    num_splits = max(1, min(num_splits, total_blocks))
    blocks_per_split = -(-total_blocks // num_splits)
    has_phantom = num_splits * blocks_per_split > total_blocks
    needs_row_mask = (num_splits * blocks_per_split * tm) != n

    kernel = functools.partial(
        _label_smoothing_kernel,
        smoothing=float(smoothing), num_classes=c, n_valid=n,
        block_rows=tm, blocks_per_split=blocks_per_split,
        needs_row_mask=needs_row_mask)

    last_block = total_blocks - 1

    def row_block(p, i):
        blk = p * blocks_per_split + i
        if has_phantom:
            # Keep phantom tail blocks in-bounds; their rows are masked in-kernel.
            blk = jnp.minimum(blk, last_block)
        return (blk, 0)

    partials = pl.pallas_call(
        kernel,
        out_shape=jax.ShapeDtypeStruct((num_splits, 8, 128), jnp.float32),
        grid_spec=pltpu.PrefetchScalarGridSpec(
            num_scalar_prefetch=0,
            grid=(num_splits, blocks_per_split),
            in_specs=[
                pl.BlockSpec((tm, c), row_block),
                pl.BlockSpec((tm, 1), row_block),
            ],
            out_specs=pl.BlockSpec((1, 8, 128), lambda p, i: (p, 0, 0)),
            scratch_shapes=[pltpu.VMEM((tm, 1), jnp.float32)],
        ),
        compiler_params=pltpu.CompilerParams(
            dimension_semantics=("parallel", "arbitrary"),
            vmem_limit_bytes=vmem_limit_bytes,
        ),
    )(x2, tgt2d)

    return jnp.sum(partials[:, 0, 0]) / jnp.float32(n)


def _reference(x, target, smoothing=0.05):
    logits = jax.nn.log_softmax(x.astype(jnp.float32), axis=-1)
    one_hot = jax.nn.one_hot(target, x.shape[-1], dtype=jnp.float32)
    nll = -jnp.sum(logits * one_hot, axis=-1)
    smooth = -jnp.mean(logits, axis=-1)
    loss = (1.0 - smoothing) * nll + smoothing * smooth
    return jnp.mean(loss)


if __name__ == "__main__":
    smoothing = 0.05
    key = jax.random.PRNGKey(0)
    k1, k2, k3, k4, k5, k6 = jax.random.split(key, 6)

    # Case 1: shape matching the module's typical use (batch=16, C=32), f32.
    x = jax.random.normal(k1, (16, 32), dtype=jnp.float32)
    t = jax.random.randint(k2, (16,), 0, 32, dtype=jnp.int32)
    loss = jax.block_until_ready(label_smoothing_loss(x, t, smoothing=smoothing))
    ref = _reference(x, t, smoothing)
    assert jnp.allclose(loss, ref, atol=1e-5, rtol=1e-5), (loss, ref)

    # Case 2: ragged rows + multi-block + 2-way split path (forced small tiles):
    # n=37, tm=8 -> 5 data blocks over a (2,3) grid => phantom block clamping,
    # ragged trailing block, and the in-kernel row mask are all exercised.
    x2 = jax.random.normal(k3, (37, 40), dtype=jnp.float32)
    t2 = jax.random.randint(k4, (37,), 0, 40, dtype=jnp.int32)
    loss2 = jax.block_until_ready(
        label_smoothing_loss(x2, t2, smoothing=smoothing,
                             num_splits=2, block_rows=8))
    ref2 = _reference(x2, t2, smoothing)
    assert jnp.allclose(loss2, ref2, atol=1e-5, rtol=1e-5), (loss2, ref2)

    # Case 3: bf16 activations (native-dtype max / gather path).
    x3 = jax.random.normal(k5, (24, 32), dtype=jnp.bfloat16)
    t3 = jax.random.randint(k6, (24,), 0, 32, dtype=jnp.int32)
    loss3 = jax.block_until_ready(label_smoothing_loss(x3, t3, smoothing=smoothing))
    ref3 = _reference(x3, t3, smoothing)
    assert jnp.allclose(loss3, ref3, atol=1e-4, rtol=1e-4), (loss3, ref3)

    print("KERNEL_OK")
</pallas_src>

<mosaic_0001>
module attributes {stable_mosaic.version = 11 : i64} {
  func.func @_label_smoothing_kernel(%arg0: i32, %arg1: i32, %arg2: memref<16x32xf32, #tpu.memory_space<vmem>>, %arg3: memref<16x1xi32, #tpu.memory_space<vmem>>, %arg4: memref<1x8x128xf32, #tpu.memory_space<vmem>>, %arg5: memref<16x1xf32, #tpu.memory_space<vmem>>) attributes {dimension_semantics = [#tpu.dimension_semantics<parallel>, #tpu.dimension_semantics<arbitrary>], iteration_bounds = array<i64: 1, 1>, scalar_prefetch = 0 : i64, scratch_operands = 1 : i64, tpu.core_type = #tpu.core_type<tc>, window_params = [{transform_indices = @transform_0, window_bounds = array<i64: 16, 32>}, {transform_indices = @transform_1, window_bounds = array<i64: 16, 1>}, {transform_indices = @transform_2, window_bounds = array<i64: 1, 8, 128>}]} {
    %c0_i32 = arith.constant 0 : i32
    %0 = arith.cmpi eq, %arg1, %c0_i32 : i32
    %1 = arith.extui %0 : i1 to i32
    %c0_i32_0 = arith.constant 0 : i32
    %2 = arith.cmpi ne, %1, %c0_i32_0 : i32
    scf.if %2 {
      %cst_16 = arith.constant 0.000000e+00 : f32
      %35 = vector.broadcast %cst_16 : f32 to vector<16x1xf32>
      %c0_17 = arith.constant 0 : index
      %c0_18 = arith.constant 0 : index
      %36 = vector.load %arg5[%c0_17, %c0_18] : memref<16x1xf32, #tpu.memory_space<vmem>>, vector<16x1xf32>
      tpu.vector_store %arg5[%c0_17, %c0_18], %35 {strides = array<i32>} : memref<16x1xf32, #tpu.memory_space<vmem>>, vector<16x1xf32>,
    } else {
    }
    %c0 = arith.constant 0 : index
    %c0_1 = arith.constant 0 : index
    %3 = vector.load %arg2[%c0, %c0_1] : memref<16x32xf32, #tpu.memory_space<vmem>>, vector<16x32xf32>
    %c0_2 = arith.constant 0 : index
    %c0_3 = arith.constant 0 : index
    %4 = vector.load %arg3[%c0_2, %c0_3] : memref<16x1xi32, #tpu.memory_space<vmem>>, vector<16x1xi32>
    %cst = arith.constant dense<0xFF800000> : vector<16xf32>
    %5 = vector.multi_reduction <maximumf>, %3, %cst [1] : vector<16x32xf32> to vector<16xf32>
    %6 = vector.shape_cast %5 : vector<16xf32> to vector<16x1xf32>
    %7 = vector.broadcast %6 : vector<16x1xf32> to vector<16x32xf32>
    %8 = arith.subf %3, %7 : vector<16x32xf32>
    %9 = math.exp %8 : vector<16x32xf32>
    %cst_4 = arith.constant dense<0.000000e+00> : vector<16xf32>
    %10 = vector.multi_reduction <add>, %9, %cst_4 [1] : vector<16x32xf32> to vector<16xf32>
    %11 = vector.shape_cast %10 : vector<16xf32> to vector<16x1xf32>
    %12 = math.log %11 : vector<16x1xf32>
    %13 = arith.addf %6, %12 : vector<16x1xf32>
    %14 = tpu.iota {dimensions = array<i32: 1>} : vector<16x32xi32>
    %15 = vector.broadcast %4 : vector<16x1xi32> to vector<16x32xi32>
    %16 = arith.cmpi eq, %14, %15 : vector<16x32xi32>
    %cst_5 = arith.constant 0.000000e+00 : f32
    %17 = vector.broadcast %cst_5 : f32 to vector<16x32xf32>
    %18 = arith.select %16, %3, %17 : vector<16x32xi1>, vector<16x32xf32>
    %cst_6 = arith.constant dense<0.000000e+00> : vector<16xf32>
    %19 = vector.multi_reduction <add>, %18, %cst_6 [1] : vector<16x32xf32> to vector<16xf32>
    %20 = vector.shape_cast %19 : vector<16xf32> to vector<16x1xf32>
    %cst_7 = arith.constant dense<0.000000e+00> : vector<16xf32>
    %21 = vector.multi_reduction <add>, %3, %cst_7 [1] : vector<16x32xf32> to vector<16xf32>
    %22 = vector.shape_cast %21 : vector<16xf32> to vector<16x1xf32>
    %cst_8 = arith.constant 0.949999988 : f32
    %23 = vector.broadcast %cst_8 : f32 to vector<16x1xf32>
    %24 = arith.mulf %23, %20 : vector<16x1xf32>
    %cst_9 = arith.constant 1.562500e-03 : f32
    %25 = vector.broadcast %cst_9 : f32 to vector<16x1xf32>
    %26 = arith.mulf %25, %22 : vector<16x1xf32>
    %27 = arith.addf %24, %26 : vector<16x1xf32>
    %28 = arith.subf %13, %27 : vector<16x1xf32>
    %c0_10 = arith.constant 0 : index
    %c0_11 = arith.constant 0 : index
    %29 = vector.load %arg5[%c0_10, %c0_11] : memref<16x1xf32, #tpu.memory_space<vmem>>, vector<16x1xf32>
    %30 = arith.addf %29, %28 : vector<16x1xf32>
    %c0_12 = arith.constant 0 : index
    %c0_13 = arith.constant 0 : index
    %31 = vector.load %arg5[%c0_12, %c0_13] : memref<16x1xf32, #tpu.memory_space<vmem>>, vector<16x1xf32>
    tpu.vector_store %arg5[%c0_12, %c0_13], %30 {strides = array<i32>} : memref<16x1xf32, #tpu.memory_space<vmem>>, vector<16x1xf32>,
    %c0_i32_14 = arith.constant 0 : i32
    %32 = arith.cmpi eq, %arg1, %c0_i32_14 : i32
    %33 = arith.extui %32 : i1 to i32
    %c0_i32_15 = arith.constant 0 : i32
    %34 = arith.cmpi ne, %33, %c0_i32_15 : i32
    scf.if %34 {
      %c0_16 = arith.constant 0 : index
      %c0_17 = arith.constant 0 : index
      %35 = vector.load %arg5[%c0_16, %c0_17] : memref<16x1xf32, #tpu.memory_space<vmem>>, vector<16x1xf32>
      %cst_18 = arith.constant dense<0.000000e+00> : vector<1xf32>
      %36 = vector.multi_reduction <add>, %35, %cst_18 [0] : vector<16x1xf32> to vector<1xf32>
      %37 = vector.shape_cast %36 : vector<1xf32> to vector<1x1xf32>
      %cst_19 = arith.constant 0.000000e+00 : f32
      %38 = vector.broadcast %cst_19 : f32 to vector<1x8x128xf32>
      %39 = vector.shape_cast %37 : vector<1x1xf32> to vector<1x1x1xf32>
      %40 = vector.broadcast %39 : vector<1x1x1xf32> to vector<1x8x128xf32>
      %41 = arith.addf %38, %40 : vector<1x8x128xf32>
      %c0_20 = arith.constant 0 : index
      %c0_21 = arith.constant 0 : index
      %c0_22 = arith.constant 0 : index
      %42 = vector.load %arg4[%c0_20, %c0_21, %c0_22] : memref<1x8x128xf32, #tpu.memory_space<vmem>>, vector<1x8x128xf32>
      tpu.vector_store %arg4[%c0_20, %c0_21, %c0_22], %41 {strides = array<i32>} : memref<1x8x128xf32, #tpu.memory_space<vmem>>, vector<1x8x128xf32>,
    } else {
    }
    return
  }
  func.func @transform_0(%arg0: i32, %arg1: i32) -> (i32, i32) {
    %c1_i32 = arith.constant 1 : i32
    %0 = arith.muli %arg0, %c1_i32 : i32
    %1 = arith.addi %0, %arg1 : i32
    %c0_i32 = arith.constant 0 : i32
    %c0_i32_0 = arith.constant 0 : i32
    return %1, %c0_i32 : i32, i32
  }
  func.func @transform_1(%arg0: i32, %arg1: i32) -> (i32, i32) {
    %c1_i32 = arith.constant 1 : i32
    %0 = arith.muli %arg0, %c1_i32 : i32
    %1 = arith.addi %0, %arg1 : i32
    %c0_i32 = arith.constant 0 : i32
    %c0_i32_0 = arith.constant 0 : i32
    return %1, %c0_i32 : i32, i32
  }
  func.func @transform_2(%arg0: i32, %arg1: i32) -> (i32, i32, i32) {
    %c0_i32 = arith.constant 0 : i32
    %c0_i32_0 = arith.constant 0 : i32
    %c0_i32_1 = arith.constant 0 : i32
    return %arg0, %c0_i32, %c0_i32_0 : i32, i32, i32
  }
}

</mosaic_0001>

<bundles_post_ra>
// kernel: tpu_custom_call.1
= control target key start
LH: loop header
LB: loop body
LE: loop exit
PB: predicated region body
PF: predicated region fallthrough
CT: control target
= control target key end

     0   :  { %vm67_vm0 = vcmask 261120   ;;  %v215_v4 = vmov 0   ;;  %s271_s0 = inlined_call_operand.vmem [shape: f32[16,32], index: 0, kind: input, shape index: {}]   ;;  %s272_s1 = inlined_call_operand.vmem [shape: s32[16,1], index: 1, kind: input, shape index: {}]   ;;  %s273_s2 = inlined_call_operand.hbm [shape: f32[1,8,128], index: 2, kind: output, shape index: {}]  }
   0x1   :  { %v63_v0 = vld [vmem:[%s271_s0] sm:$0xff]  ;;  %v64_v1 = vld [vmem:[%s271_s0 + $0x8] sm:$0xff]  ;;  %181 = vset.pattern.permute.xlu1 %v215_v4  ;;  %182 = vset.pattern.permute.xlu0 %v215_v4 }
   0x2   :  { %v65_v2 = vld [vmem:[%s272_s1] sm:$0xff]  ;;  %v68_v3 = vsel %vm67_vm0, %v63_v0, -inf }
   0x3   :  { %7 = vsyncpa [#allocation4], 0  ;;  %69 = vmax.xlane.f32.xlu0 %v68_v3  ;;  %95 = vperm.xlu1 %181, %v65_v2   ;;  %v71_v5 = vsel %vm67_vm0, %v64_v1, -inf  ;;  %v66_v6 = vld [vmem:[%s272_s1 + $0x8] sm:$0xff]  ;;  %v92_v11 = vlaneseq  ;;  %v110_v25 = vsel %vm67_vm0, %v63_v0, 0.0  ;;  %v113_v26 = vsel %vm67_vm0, %v64_v1, 0.0 }
   0x4   :  { %vm60_vm3 = vcmask 7168   ;;  %v216_v27 = vmov 0.0   ;;  %s217_s0 = smov [#allocation3]  }
   0x5   :  { %v93_v14 = vand.u32 127, %v92_v11  ;;  %61 = vst.msk [vmem:[#allocation2] sm:$0xff] %vm60_vm3, %v216_v27  ;;  %62 = vst.msk [vmem:[#allocation2 + $0x8] sm:$0xff] %vm60_vm3, %v216_v27  ;;  %s158_s1 = sshll.u32 %s217_s0, 4  ;;  %s159_s1 = int_to_ptr.vmem [resolvable:$true] %s158_s1 }
   0x6   :  { %s191_s17 = scalar_lea.vmem %s159_s1, 128  ;;  %p196_p1 = scmp.lt.s32.totalorder %s159_s1, %s159_s1 }
   0x7   :  { %72 = vmax.xlane.f32.xlu0 %v71_v5  ;;  %98 = vperm.xlu1 %181, %v66_v6   ;;  %p192_p0 = scmp.ne.s32.totalorder %s159_s1, %s191_s17  ;;  %p197_p2 = scmp.lt.s32.totalorder %s191_s17, %s191_s17 }
   0x9   :  { %p198_p3 = por %p197_p2, %p196_p1 }
   0xb   :  { %p199_p4 = pnand %p198_p3, %p192_p0 }
   0xc   :  { %v124_v41 = vld [vmem:[#allocation2] sm:$0xff]  ;;  %v125_v49 = vld [vmem:[#allocation2 + $0x8] sm:$0xff] }
  0x82   :  { %v96_v15 = vpop.permute.xlu1 %95 }
  0x83   :  { %vm100_vm1 = vcmp.eq.s32.totalorder %v93_v14, %v96_v15 }
  0x84   :  { %v102_v18 = vsel %vm100_vm1, %v63_v0, 0.0 }
  0x85   :  { %v104_v20 = vsel %vm67_vm0, %v102_v18, 0.0 }
  0x86   :  { %v99_v17 = vpop.permute.xlu1 %98 }
  0x87   :  { %vm101_vm2 = vcmp.eq.s32.totalorder %v93_v14, %v99_v17 }
  0x88   :  { %v103_v23 = vsel %vm101_vm2, %v64_v1, 0.0 }
  0x89   :  { %v107_v24 = vsel %vm67_vm0, %v103_v23, 0.0 }
  0x90   :  { %v70_v7 = vpop.xlane.xlu0 %69 }
  0x91   :  { %v74_v8 = vsub.f32 %v63_v0, %v70_v7 }
  0x93   :  { %v76_v9 = vmul.f32 1.442695, %v74_v8 }
  0x94   :  { %v73_v10 = vpop.xlane.xlu0 %72 }
  0x95   :  { %183 = vpow2.f32 %v76_v9  ;;  %v75_v12 = vsub.f32 %v64_v1, %v73_v10 }
  0x97   :  { %v78_v13 = vmul.f32 1.442695, %v75_v12 }
  0x99   :  { %185 = vpow2.f32 %v78_v13 }
  0x9f   :  { %v184_v16 = vpop.eup %183 }
  0xa0   :  { %v80_v19 = vsel %vm67_vm0, %v184_v16, 0.0 }
  0xa1   :  { %81 = vadd.xlane.f32.xlu0 %v80_v19 }
  0xa3   :  { %v186_v21 = vpop.eup %185 }
  0xa4   :  { %v83_v22 = vsel %vm67_vm0, %v186_v21, 0.0 }
  0xa5   :  { %105 = vadd.xlane.f32.xlu0 %v104_v20  ;;  %84 = vadd.xlane.f32.xlu1 %v83_v22 }
  0xa9   :  { %108 = vadd.xlane.f32.xlu0 %v107_v24 }
  0xad   :  { %111 = vadd.xlane.f32.xlu0 %v110_v25 }
  0xb1   :  { %114 = vadd.xlane.f32.xlu0 %v113_v26 }
 0x12e   :  { %v82_v28 = vpop.xlane.xlu0 %81 }
 0x12f   :  { %187 = vlog2.f32 %v82_v28 }
 0x132   :  { %v85_v29 = vpop.xlane.xlu1 %84  ;;  %v106_v30 = vpop.xlane.xlu0 %105 }
 0x133   :  { %189 = vlog2.f32 %v85_v29  ;;  %v116_v35 = vmul.f32 0.95, %v106_v30 }
 0x136   :  { %v109_v31 = vpop.xlane.xlu0 %108 }
 0x137   :  { %v117_v43 = vmul.f32 0.95, %v109_v31 }
 0x139   :  { %v188_v32 = vpop.eup %187 }
 0x13a   :  { %v87_v33 = vmul.f32 0.6931472, %v188_v32  ;;  %v112_v34 = vpop.xlane.xlu0 %111 }
 0x13b   :  { %v118_v36 = vmul.f32 0.0015625, %v112_v34 }
 0x13c   :  { %v90_v37 = vadd.f32 %v87_v33, %v70_v7 }
 0x13d   :  { %v190_v38 = vpop.eup %189  ;;  %v120_v39 = vadd.f32 %v118_v36, %v116_v35 }
 0x13e   :  { %v89_v40 = vmul.f32 0.6931472, %v190_v38  ;;  %v115_v42 = vpop.xlane.xlu0 %114 }
 0x13f   :  { %v122_v44 = vsub.f32 %v90_v37, %v120_v39  ;;  %v119_v45 = vmul.f32 0.0015625, %v115_v42 }
 0x140   :  { %v91_v46 = vadd.f32 %v89_v40, %v73_v10 }
 0x141   :  { %v126_v47 = vadd.f32 %v124_v41, %v122_v44  ;;  %v121_v48 = vadd.f32 %v119_v45, %v117_v43 }
 0x143   :  { %129 = vst.msk [vmem:[#allocation2] sm:$0xff] %vm60_vm3, %v126_v47  ;;  %v123_v50 = vsub.f32 %v91_v46, %v121_v48 }
 0x145   :  { %v127_v51 = vadd.f32 %v125_v49, %v123_v50 }
 0x147   :  { %130 = vst.msk [vmem:[#allocation2 + $0x8] sm:$0xff] %vm60_vm3, %v127_v51 }
 0x14a   :  { %v134_v52 = vld [vmem:[#allocation2] sm:$0xff] }
 0x14b   :  { %v136_v54 = vsel %vm60_vm3, %v134_v52, 0.0 }
 0x14e   :  { %v135_v53 = vld [vmem:[#allocation2 + $0x8] sm:$0xff] }
 0x14f   :  { %v137_v55 = vsel %vm60_vm3, %v135_v53, 0.0 }
 0x150   :  { %v138_v56 = vadd.f32 %v137_v55, %v136_v54 }
 0x152   :  { %v139_v57 = vrot.slane %v138_v56, 4 }
 0x154   :  { %v140_v58 = vadd.f32 %v139_v57, %v138_v56 }
 0x156   :  { %v141_v59 = vrot.slane %v140_v58, 2 }
 0x158   :  { %v142_v60 = vadd.f32 %v141_v59, %v140_v58 }
 0x15a   :  { %v143_v61 = vrot.slane %v142_v60, 1 }
 0x15c   :  { %v144_v62 = vadd.f32 %v143_v61, %v142_v60 }
 0x15e   :  { %147 = vperm.xlu0 %182, %v144_v62  }
 0x1dd   :  { %v148_v63 = vpop.permute.xlu0 %147 }
 0x1de   :  { %151 = vst [vmem:[#allocation3] sm:$0xff] %v148_v63 }
 0x1df   :  { %202 = shalt.err (!%p199_p4)
}
 0x1e0   :  { %s203_s20 = scalar_lea.hbm %s273_s2, 128 }
 0x1e1   :  { %p204_p5 = scmp.ne.s32.totalorder %s273_s2, %s203_s20  ;;  %p207_p6 = scmp.lt.u32.totalorder %s203_s20, %s273_s2 }
 0x1e3   :  { %p209_p7 = pnand %p207_p6, %p204_p5 }
 0x1e5   :  { %212 = shalt.err (!%p209_p7)
}
 0x1e6   :  { %161 = dma.vmem_to_hbm [thread:$0]  %s159_s1, 128, %s273_s2, [#allocation4]  }
 0x1e7   :  { %213 = dma.done.wait [#allocation4], 128  }
 0x1e8   :  { %214 = vsyncadd [#allocation4], 4294967168 }
 0x1e9   :  { %165 = vsyncpa [#allocation4], 1 }

</bundles_post_ra>
